<compile_context>
chip_gen: v5e
topology: v5e:2x2
jax: 0.10.0
libtpu: 0.0.40
codegen_flags: <defaults>
</compile_context>

<pallas_src>
import functools

import jax
import jax.numpy as jnp
from jax import lax
from jax.experimental import pallas as pl
from jax.experimental.pallas import tpu as pltpu


def _round_up(x, m):
    return ((x + m - 1) // m) * m


# Exactly representable in both f32 and bf16 (power of two) so the running-max
# sentinel survives the bf16 snapping below without drift.
_NEG_BIG = float(-(2.0 ** 100))


def _egat_kernel(num_heads,
                 fni_ref, fnj_ref, hsrc_ref, efeat_ref, dst_ref,
                 w_fij_ref, attn_bd_ref, expand_ref,
                 fout_ref, hout_ref,
                 m_run, den_run):
    """One grid step = one tile of edges. Heads are packed on the lane axis."""
    f32, bf16 = jnp.float32, jnp.bfloat16
    t = pl.program_id(0)
    neg_big = jnp.float32(_NEG_BIG)
    n_nodes = hout_ref.shape[0]
    tile_e = dst_ref.shape[0]

    # ---- first tile: zero the carried accumulators ---------------------------
    @pl.when(t == 0)
    def _init():
        m_run[...] = jnp.full(m_run.shape, neg_big, dtype=f32)
        den_run[...] = jnp.zeros(den_run.shape, dtype=f32)
        hout_ref[...] = jnp.zeros(hout_ref.shape, dtype=f32)

    # ---- per-tile dst one-hot / masks built in-register (no O(E*N) HBM) ------
    dst_idx = dst_ref[...]                                            # (T, 1) int32
    valid = dst_idx >= 0                                              # (T, 1) bool
    oh = dst_idx == lax.broadcasted_iota(jnp.int32, (tile_e, n_nodes), 1)
    dst_f = oh.astype(f32)                                            # exact 0/1
    dst_b = oh.astype(bf16)
    mask_neg = jnp.where(oh, 0.0, neg_big)                            # (T, N) f32

    # ---- edge features: f'_ij = leaky_relu(fni[src] + fnj[dst] + W_fij f_ij + b)
    f_e = (fni_ref[...].astype(f32) + fnj_ref[...].astype(f32)
           + jnp.dot(efeat_ref[...], w_fij_ref[...],
                     preferred_element_type=f32))
    f_e = jnp.where(f_e >= 0, f_e, jnp.float32(0.01) * f_e)   # F.leaky_relu default 0.01
    f_e_b = f_e.astype(bf16)
    fout_ref[...] = f_e_b                                      # bf16 lane-dense store

    # ---- per-head attention logits (T, H) -------------------------------------
    e = jnp.dot(f_e_b, attn_bd_ref[...], preferred_element_type=f32)
    e = jnp.where(valid, e, neg_big)                           # kill padded edge rows

    # ---- online edge_softmax over the incoming edges of each dst node ---------
    m_prev = m_run[...]                                        # (H, N)
    rows = [jnp.max(e[:, h:h + 1] + mask_neg, axis=0, keepdims=True)
            for h in range(num_heads)]                         # tiny static unroll
    m_tile = jnp.concatenate(rows, axis=0)                     # (H, N)
    # Snap to the bf16 grid so the one-hot gather / expansion matmuls below are
    # exact even if the MXU truncates f32 operands to bf16.
    m_new = jnp.maximum(m_prev, m_tile).astype(bf16).astype(f32)

    scale = jnp.exp(m_prev - m_new).astype(bf16).astype(f32)   # (H, N) in [0, 1]
    den_run[...] = den_run[...] * scale
    scale_exp = lax.dot_general(scale, expand_ref[...],
                                (((0,), (0,)), ((), ())),
                                preferred_element_type=f32)    # (N, NDp)
    hout_ref[...] = hout_ref[...] * scale_exp
    m_run[...] = m_new

    # gather each edge's running dst max: (T,N) . (H,N)^T -> (T,H)  (exact)
    e_max = lax.dot_general(dst_f, m_new, (((1,), (1,)), ((), ())),
                            preferred_element_type=f32)
    p = jnp.exp(e - e_max)                                     # (T, H)

    # denominator scatter-add: p^T . dst -> (H, N)
    den_run[...] = den_run[...] + lax.dot_general(
        p, dst_f, (((0,), (0,)), ((), ())), preferred_element_type=f32)

    # weighted messages and numerator scatter-add (bf16 MXU, f32 accumulate)
    p_exp = jnp.dot(p, expand_ref[...], preferred_element_type=f32)   # (T, NDp)
    msg = (hsrc_ref[...].astype(f32) * p_exp).astype(bf16)
    hout_ref[...] = hout_ref[...] + lax.dot_general(
        dst_b, msg, (((0,), (0,)), ((), ())), preferred_element_type=f32)

    # ---- last tile: normalize the resident numerator in place -----------------
    @pl.when(t == pl.num_programs(0) - 1)
    def _finalize():
        den_exp = lax.dot_general(den_run[...], expand_ref[...],
                                  (((0,), (0,)), ((), ())),
                                  preferred_element_type=f32)         # (N, NDp)
        hout_ref[...] = hout_ref[...] / jnp.maximum(den_exp, jnp.float32(1e-38))


def egat_conv(nfeats, efeats, src, dst, params,
              num_heads, out_node_feats, out_edge_feats, *, tile_e=512):
    """Pallas EGATConv forward. Returns (h_out [N,H,Dn], f_out [E,H,Fe]).

    Note: DGL raises on 0-in-degree graphs; here such nodes silently receive
    all-zero output rows (denominator clamped) -- validate upstream if needed.
    """
    f32, bf16, i32 = jnp.float32, jnp.bfloat16, jnp.int32
    N, din_n = nfeats.shape
    E, din_e = efeats.shape
    H, Fe, Dn = num_heads, out_edge_feats, out_node_feats
    FE, ND = H * Fe, H * Dn
    FEp, NDp = _round_up(FE, 128), _round_up(ND, 128)

    tile_e = _round_up(min(tile_e, max(E, 16)), 16)      # bf16 sublane packing
    Ep = _round_up(E, tile_e)
    n_tiles = Ep // tile_e

    nfeats = nfeats.astype(f32)
    # ---- node projections hoisted out of the kernel (plain XLA matmuls) ------
    fni = nfeats @ params["w_ni"].astype(f32) + params["bias"].astype(f32)[None, :]
    fnj = nfeats @ params["w_nj"].astype(f32)
    hnode = nfeats @ params["w_node"].astype(f32) + params["b_node"].astype(f32)[None, :]

    def pad_edge(x, cols):
        r, c = x.shape
        return jnp.pad(x, ((0, Ep - r), (0, cols - c)))

    # ---- per-edge operands, gathered by XLA and streamed by the kernel (bf16) -
    fni_e = pad_edge(fni[src].astype(bf16), FEp)          # (Ep, FEp)  fni[src] + bias
    fnj_e = pad_edge(fnj[dst].astype(bf16), FEp)          # (Ep, FEp)
    hsrc_e = pad_edge(hnode[src].astype(bf16), NDp)       # (Ep, NDp)
    efeats_e = pad_edge(efeats.astype(bf16), din_e)       # (Ep, din_e)
    dst_e = jnp.pad(dst.astype(i32).reshape(E, 1), ((0, Ep - E), (0, 0)),
                    constant_values=-1)                   # (Ep, 1); -1 marks padding

    # ---- small resident operands ----------------------------------------------
    w_fij = jnp.pad(params["w_fij"].astype(bf16), ((0, 0), (0, FEp - FE)))
    attn_bd = jnp.zeros((FEp, H), f32)                    # block-diag head reducer
    for h in range(H):
        attn_bd = attn_bd.at[h * Fe:(h + 1) * Fe, h].set(params["attn"][h].astype(f32))
    attn_bd = attn_bd.astype(bf16)
    expand = jnp.zeros((H, NDp), f32)                     # head -> lane-slab expander
    for h in range(H):
        expand = expand.at[h, h * Dn:(h + 1) * Dn].set(1.0)

    grid_spec = pltpu.PrefetchScalarGridSpec(
        num_scalar_prefetch=0,
        grid=(n_tiles,),
        in_specs=[
            pl.BlockSpec((tile_e, FEp), lambda t: (t, 0)),    # fni[src] + bias
            pl.BlockSpec((tile_e, FEp), lambda t: (t, 0)),    # fnj[dst]
            pl.BlockSpec((tile_e, NDp), lambda t: (t, 0)),    # hnode[src]
            pl.BlockSpec((tile_e, din_e), lambda t: (t, 0)),  # raw edge feats
            pl.BlockSpec((tile_e, 1), lambda t: (t, 0)),      # dst indices
            pl.BlockSpec((din_e, FEp), lambda t: (0, 0)),     # W_fij (resident)
            pl.BlockSpec((FEp, H), lambda t: (0, 0)),         # attn block-diag
            pl.BlockSpec((H, NDp), lambda t: (0, 0)),         # head expander
        ],
        out_specs=[
            pl.BlockSpec((tile_e, FEp), lambda t: (t, 0)),    # f_out tile (bf16)
            pl.BlockSpec((N, NDp), lambda t: (0, 0)),         # h_out slab (resident acc)
        ],
        scratch_shapes=[
            pltpu.VMEM((H, N), f32),    # running per-node max
            pltpu.VMEM((H, N), f32),    # running softmax denominator
        ],
    )

    # ---- VMEM budget derived from the actual working set ----------------------
    bytes_per_tile = tile_e * (2 * FEp * 2 + NDp * 2 + din_e * 2 + 4 + FEp * 2)
    bytes_resident = (N * NDp * 4 + 2 * H * N * 4
                      + (din_e * FEp + FEp * H) * 2 + H * NDp * 4)
    bytes_temp = 4 * tile_e * max(N, NDp) * 4             # (T, N)/(T, NDp) temporaries
    need = 2 * bytes_per_tile + bytes_resident + bytes_temp
    try:
        cap = int(getattr(pltpu.get_tpu_info(), "vmem_capacity_bytes",
                          64 * 1024 * 1024))
    except Exception:
        cap = 64 * 1024 * 1024
    vmem_limit = int(min(cap * 3 // 4, max(2 * need, 32 * 1024 * 1024)))

    flops = (2 * Ep * din_e * FEp               # edge projection
             + 2 * Ep * FEp * H                 # attention logits
             + 2 * Ep * N * (2 * H + NDp)       # max gather + den/msg scatters
             + 2 * Ep * H * NDp                 # head -> lane expansion
             + 2 * n_tiles * H * N * NDp)       # online-softmax rescale expansion
    transcendentals = Ep * H + n_tiles * H * N
    bytes_accessed = (Ep * (2 * FEp + NDp + din_e) * 2 + Ep * 4
                      + Ep * FEp * 2 + N * NDp * 4
                      + (din_e * FEp + FEp * H) * 2 + H * NDp * 4)

    fout, hout = pl.pallas_call(
        functools.partial(_egat_kernel, H),
        out_shape=(jax.ShapeDtypeStruct((Ep, FEp), bf16),
                   jax.ShapeDtypeStruct((N, NDp), f32)),
        grid_spec=grid_spec,
        compiler_params=pltpu.CompilerParams(
            dimension_semantics=("arbitrary",),    # edge axis carries accumulators
            vmem_limit_bytes=vmem_limit),
        cost_estimate=pl.CostEstimate(flops=flops,
                                      transcendentals=transcendentals,
                                      bytes_accessed=bytes_accessed),
    )(fni_e, fnj_e, hsrc_e, efeats_e, dst_e, w_fij, attn_bd, expand)

    f_out = fout[:E, :FE].astype(f32).reshape(E, H, Fe)
    h_out = hout[:, :ND].reshape(N, H, Dn)
    return h_out, f_out


# ------------------------- parameter init (mirrors torch module) ---------------


def _xavier_normal(key, shape_out_in, gain):
    fan_out, fan_in = shape_out_in
    std = gain * jnp.sqrt(2.0 / (fan_in + fan_out))
    return std * jax.random.normal(key, shape_out_in, dtype=jnp.float32)


def make_params(key, in_node_feats, in_edge_feats,
                out_node_feats, out_edge_feats, num_heads):
    gain = jnp.sqrt(2.0)  # init.calculate_gain('relu')
    H, Fe, Dn = num_heads, out_edge_feats, out_node_feats
    ks = jax.random.split(key, 6)
    # nn.Linear stores (out, in); forward is x @ W.T -> keep (in, H*out) packed form.
    w_node = _xavier_normal(ks[0], (H * Dn, in_node_feats), gain).T
    w_ni = _xavier_normal(ks[1], (H * Fe, in_node_feats), gain).T
    w_nj = _xavier_normal(ks[2], (H * Fe, in_node_feats), gain).T
    w_fij = _xavier_normal(ks[3], (H * Fe, in_edge_feats), gain).T
    attn = _xavier_normal(ks[4], (H * Fe, 1), gain).reshape(H, Fe)
    bound = 1.0 / jnp.sqrt(jnp.float32(in_node_feats))
    b_node = jax.random.uniform(ks[5], (H * Dn,), jnp.float32, -bound, bound)
    bias = jnp.zeros((H * Fe,), jnp.float32)  # init.constant_(bias, 0)
    return {"w_node": w_node, "w_ni": w_ni, "w_nj": w_nj, "w_fij": w_fij,
            "attn": attn, "b_node": b_node, "bias": bias}


# ------------------------- pure-JAX reference (for sanity check) ---------------


def egat_reference(nfeats, efeats, src, dst, params,
                   num_heads, out_node_feats, out_edge_feats):
    N = nfeats.shape[0]
    E = efeats.shape[0]
    H, Fe, Dn = num_heads, out_edge_feats, out_node_feats
    f_e = ((nfeats @ params["w_ni"])[src] + (nfeats @ params["w_nj"])[dst]
           + efeats @ params["w_fij"] + params["bias"][None, :])
    f_e = jnp.where(f_e >= 0, f_e, 0.01 * f_e)
    f_out = f_e.reshape(E, H, Fe)
    e = (f_out * params["attn"][None]).sum(-1)                     # (E, H)
    m = jax.ops.segment_max(e, dst, num_segments=N)                # (N, H)
    p = jnp.exp(e - m[dst])
    den = jax.ops.segment_sum(p, dst, num_segments=N)
    a = p / den[dst]
    h_node = (nfeats @ params["w_node"] + params["b_node"][None]).reshape(N, H, Dn)
    h_out = jax.ops.segment_sum(h_node[src] * a[:, :, None], dst, num_segments=N)
    return h_out, f_out


if __name__ == "__main__":
    # Sizes from the EGATConv docstring example.
    num_nodes, num_edges = 8, 30
    in_node_feats, in_edge_feats = 20, 12
    out_node_feats, out_edge_feats, num_heads = 15, 10, 3

    key = jax.random.PRNGKey(0)
    k_n, k_e, k_src, k_p = jax.random.split(key, 4)

    nfeats = jax.random.uniform(k_n, (num_nodes, in_node_feats), jnp.float32)
    efeats = jax.random.uniform(k_e, (num_edges, in_edge_feats), jnp.float32)
    # Every node has in-degree >= 1 (DGL raises on 0-in-degree graphs).
    dst = jnp.arange(num_edges, dtype=jnp.int32) % num_nodes
    src = jax.random.randint(k_src, (num_edges,), 0, num_nodes, jnp.int32)

    params = make_params(k_p, in_node_feats, in_edge_feats,
                         out_node_feats, out_edge_feats, num_heads)

    # tile_e=16 -> two edge tiles, exercising the online-softmax accumulation.
    h_out, f_out = egat_conv(nfeats, efeats, src, dst, params,
                             num_heads, out_node_feats, out_edge_feats, tile_e=16)
    jax.block_until_ready((h_out, f_out))

    assert h_out.shape == (num_nodes, num_heads, out_node_feats)
    assert f_out.shape == (num_edges, num_heads, out_edge_feats)
    assert bool(jnp.all(jnp.isfinite(h_out))) and bool(jnp.all(jnp.isfinite(f_out)))

    h_ref, f_ref = egat_reference(nfeats, efeats, src, dst, params,
                                  num_heads, out_node_feats, out_edge_feats)
    assert jnp.allclose(f_out, f_ref, rtol=5e-2, atol=5e-2)
    assert jnp.allclose(h_out, h_ref, rtol=5e-2, atol=5e-2)

    print("KERNEL_OK")
</pallas_src>

<mosaic_0001>
module attributes {stable_mosaic.version = 11 : i64} {
  func.func @_egat_kernel(%arg0: i32, %arg1: memref<16x128xbf16, #tpu.memory_space<vmem>>, %arg2: memref<16x128xbf16, #tpu.memory_space<vmem>>, %arg3: memref<16x128xbf16, #tpu.memory_space<vmem>>, %arg4: memref<16x12xbf16, #tpu.memory_space<vmem>>, %arg5: memref<16x1xi32, #tpu.memory_space<vmem>>, %arg6: memref<12x128xbf16, #tpu.memory_space<vmem>>, %arg7: memref<128x3xbf16, #tpu.memory_space<vmem>>, %arg8: memref<3x128xf32, #tpu.memory_space<vmem>>, %arg9: memref<16x128xbf16, #tpu.memory_space<vmem>>, %arg10: memref<8x128xf32, #tpu.memory_space<vmem>>, %arg11: memref<3x8xf32, #tpu.memory_space<vmem>>, %arg12: memref<3x8xf32, #tpu.memory_space<vmem>>) attributes {dimension_semantics = [#tpu.dimension_semantics<arbitrary>], iteration_bounds = array<i64: 2>, scalar_prefetch = 0 : i64, scratch_operands = 2 : i64, tpu.core_type = #tpu.core_type<tc>, window_params = [{transform_indices = @transform_0, window_bounds = array<i64: 16, 128>}, {transform_indices = @transform_1, window_bounds = array<i64: 16, 128>}, {transform_indices = @transform_2, window_bounds = array<i64: 16, 128>}, {transform_indices = @transform_3, window_bounds = array<i64: 16, 12>}, {transform_indices = @transform_4, window_bounds = array<i64: 16, 1>}, {pipeline_mode = #tpu.pipeline_mode<synchronous>, transform_indices = @transform_5, window_bounds = array<i64: 12, 128>}, {pipeline_mode = #tpu.pipeline_mode<synchronous>, transform_indices = @transform_6, window_bounds = array<i64: 128, 3>}, {pipeline_mode = #tpu.pipeline_mode<synchronous>, transform_indices = @transform_7, window_bounds = array<i64: 3, 128>}, {transform_indices = @transform_8, window_bounds = array<i64: 16, 128>}, {pipeline_mode = #tpu.pipeline_mode<synchronous>, transform_indices = @transform_9, window_bounds = array<i64: 8, 128>}]} {
    %c0_i32 = arith.constant 0 : i32
    %0 = arith.cmpi eq, %arg0, %c0_i32 : i32
    %1 = arith.extui %0 : i1 to i32
    %cst = arith.constant -1.2676506E+30 : f32
    %c0_i32_0 = arith.constant 0 : i32
    %2 = arith.cmpi ne, %1, %c0_i32_0 : i32
    scf.if %2 {
      %92 = vector.broadcast %cst : f32 to vector<3x8xf32>
      %c0_57 = arith.constant 0 : index
      %c0_58 = arith.constant 0 : index
      %93 = vector.load %arg11[%c0_57, %c0_58] : memref<3x8xf32, #tpu.memory_space<vmem>>, vector<3x8xf32>
      tpu.vector_store %arg11[%c0_57, %c0_58], %92 {strides = array<i32>} : memref<3x8xf32, #tpu.memory_space<vmem>>, vector<3x8xf32>,
      %cst_59 = arith.constant 0.000000e+00 : f32
      %94 = vector.broadcast %cst_59 : f32 to vector<3x8xf32>
      %c0_60 = arith.constant 0 : index
      %c0_61 = arith.constant 0 : index
      %95 = vector.load %arg12[%c0_60, %c0_61] : memref<3x8xf32, #tpu.memory_space<vmem>>, vector<3x8xf32>
      tpu.vector_store %arg12[%c0_60, %c0_61], %94 {strides = array<i32>} : memref<3x8xf32, #tpu.memory_space<vmem>>, vector<3x8xf32>,
      %cst_62 = arith.constant 0.000000e+00 : f32
      %96 = vector.broadcast %cst_62 : f32 to vector<8x128xf32>
      %c0_63 = arith.constant 0 : index
      %c0_64 = arith.constant 0 : index
      %97 = vector.load %arg10[%c0_63, %c0_64] : memref<8x128xf32, #tpu.memory_space<vmem>>, vector<8x128xf32>
      tpu.vector_store %arg10[%c0_63, %c0_64], %96 {strides = array<i32>} : memref<8x128xf32, #tpu.memory_space<vmem>>, vector<8x128xf32>,
    } else {
    }
    %c0 = arith.constant 0 : index
    %c0_1 = arith.constant 0 : index
    %3 = vector.load %arg5[%c0, %c0_1] : memref<16x1xi32, #tpu.memory_space<vmem>>, vector<16x1xi32>
    %c0_i32_2 = arith.constant 0 : i32
    %4 = vector.broadcast %c0_i32_2 : i32 to vector<16x1xi32>
    %5 = arith.cmpi sge, %3, %4 : vector<16x1xi32>
    %6 = tpu.iota {dimensions = array<i32: 1>} : vector<16x8xi32>
    %7 = vector.broadcast %3 : vector<16x1xi32> to vector<16x8xi32>
    %8 = arith.cmpi eq, %7, %6 : vector<16x8xi32>
    %9 = arith.extui %8 : vector<16x8xi1> to vector<16x8xi32>
    %10 = arith.sitofp %9 : vector<16x8xi32> to vector<16x8xf32>
    %11 = arith.extui %8 : vector<16x8xi1> to vector<16x8xi32>
    %12 = arith.sitofp %11 : vector<16x8xi32> to vector<16x8xf32>
    %13 = arith.truncf %12 : vector<16x8xf32> to vector<16x8xbf16>
    %cst_3 = arith.constant 0.000000e+00 : f32
    %cst_4 = arith.constant -1.2676506E+30 : f32
    %14 = vector.broadcast %cst_3 : f32 to vector<16x8xf32>
    %15 = vector.broadcast %cst_4 : f32 to vector<16x8xf32>
    %16 = arith.select %8, %14, %15 : vector<16x8xi1>, vector<16x8xf32>
    %c0_5 = arith.constant 0 : index
    %c0_6 = arith.constant 0 : index
    %17 = vector.load %arg1[%c0_5, %c0_6] : memref<16x128xbf16, #tpu.memory_space<vmem>>, vector<16x128xbf16>
    %18 = arith.extf %17 : vector<16x128xbf16> to vector<16x128xf32>
    %c0_7 = arith.constant 0 : index
    %c0_8 = arith.constant 0 : index
    %19 = vector.load %arg2[%c0_7, %c0_8] : memref<16x128xbf16, #tpu.memory_space<vmem>>, vector<16x128xbf16>
    %20 = arith.extf %19 : vector<16x128xbf16> to vector<16x128xf32>
    %21 = arith.addf %18, %20 : vector<16x128xf32>
    %c0_9 = arith.constant 0 : index
    %c0_10 = arith.constant 0 : index
    %22 = vector.load %arg4[%c0_9, %c0_10] : memref<16x12xbf16, #tpu.memory_space<vmem>>, vector<16x12xbf16>
    %c0_11 = arith.constant 0 : index
    %c0_12 = arith.constant 0 : index
    %23 = vector.load %arg6[%c0_11, %c0_12] : memref<12x128xbf16, #tpu.memory_space<vmem>>, vector<12x128xbf16>
    %cst_13 = arith.constant dense<0.000000e+00> : vector<16x128xf32>
    %24 = tpu.matmul %22, %23, %cst_13 {dimension_numbers = #tpu.dot_dimension_numbers<[1], [0], [0], [1], [0, 0, 1, 1], [], []>} : vector<16x12xbf16>, vector<12x128xbf16>, vector<16x128xf32> -> vector<16x128xf32>
    %25 = arith.addf %21, %24 : vector<16x128xf32>
    %cst_14 = arith.constant 0.000000e+00 : f32
    %26 = vector.broadcast %cst_14 : f32 to vector<16x128xf32>
    %27 = arith.cmpf oge, %25, %26 : vector<16x128xf32>
    %cst_15 = arith.constant 0.00999999977 : f32
    %28 = vector.broadcast %cst_15 : f32 to vector<16x128xf32>
    %29 = arith.mulf %28, %25 : vector<16x128xf32>
    %30 = arith.select %27, %25, %29 : vector<16x128xi1>, vector<16x128xf32>
    %31 = arith.truncf %30 : vector<16x128xf32> to vector<16x128xbf16>
    %c0_16 = arith.constant 0 : index
    %c0_17 = arith.constant 0 : index
    %32 = vector.load %arg9[%c0_16, %c0_17] : memref<16x128xbf16, #tpu.memory_space<vmem>>, vector<16x128xbf16>
    tpu.vector_store %arg9[%c0_16, %c0_17], %31 {strides = array<i32>} : memref<16x128xbf16, #tpu.memory_space<vmem>>, vector<16x128xbf16>,
    %c0_18 = arith.constant 0 : index
    %c0_19 = arith.constant 0 : index
    %33 = vector.load %arg7[%c0_18, %c0_19] : memref<128x3xbf16, #tpu.memory_space<vmem>>, vector<128x3xbf16>
    %cst_20 = arith.constant dense<0.000000e+00> : vector<16x3xf32>
    %34 = tpu.matmul %31, %33, %cst_20 {dimension_numbers = #tpu.dot_dimension_numbers<[1], [0], [0], [1], [0, 0, 1, 1], [], []>} : vector<16x128xbf16>, vector<128x3xbf16>, vector<16x3xf32> -> vector<16x3xf32>
    %cst_21 = arith.constant -1.2676506E+30 : f32
    %35 = vector.shape_cast %5 : vector<16x1xi1> to vector<16x1xi1>
    %36 = vector.broadcast %35 : vector<16x1xi1> to vector<16x3xi1>
    %37 = vector.broadcast %cst_21 : f32 to vector<16x3xf32>
    %38 = arith.select %36, %34, %37 : vector<16x3xi1>, vector<16x3xf32>
    %c0_22 = arith.constant 0 : index
    %c0_23 = arith.constant 0 : index
    %39 = vector.load %arg11[%c0_22, %c0_23] : memref<3x8xf32, #tpu.memory_space<vmem>>, vector<3x8xf32>
    %40 = vector.extract_strided_slice %38 {offsets = [0, 0], sizes = [16, 1], strides = [1, 1]} : vector<16x3xf32> to vector<16x1xf32>
    %41 = vector.broadcast %40 : vector<16x1xf32> to vector<16x8xf32>
    %42 = arith.addf %41, %16 : vector<16x8xf32>
    %cst_24 = arith.constant dense<0xFF800000> : vector<8xf32>
    %43 = vector.multi_reduction <maximumf>, %42, %cst_24 [0] : vector<16x8xf32> to vector<8xf32>
    %44 = vector.shape_cast %43 : vector<8xf32> to vector<1x8xf32>
    %45 = vector.extract_strided_slice %38 {offsets = [0, 1], sizes = [16, 1], strides = [1, 1]} : vector<16x3xf32> to vector<16x1xf32>
    %46 = vector.broadcast %45 : vector<16x1xf32> to vector<16x8xf32>
    %47 = arith.addf %46, %16 : vector<16x8xf32>
    %cst_25 = arith.constant dense<0xFF800000> : vector<8xf32>
    %48 = vector.multi_reduction <maximumf>, %47, %cst_25 [0] : vector<16x8xf32> to vector<8xf32>
    %49 = vector.shape_cast %48 : vector<8xf32> to vector<1x8xf32>
    %50 = vector.extract_strided_slice %38 {offsets = [0, 2], sizes = [16, 1], strides = [1, 1]} : vector<16x3xf32> to vector<16x1xf32>
    %51 = vector.broadcast %50 : vector<16x1xf32> to vector<16x8xf32>
    %52 = arith.addf %51, %16 : vector<16x8xf32>
    %cst_26 = arith.constant dense<0xFF800000> : vector<8xf32>
    %53 = vector.multi_reduction <maximumf>, %52, %cst_26 [0] : vector<16x8xf32> to vector<8xf32>
    %54 = vector.shape_cast %53 : vector<8xf32> to vector<1x8xf32>
    %55 = tpu.concatenate %44, %49, %54 in 0 : vector<1x8xf32>, vector<1x8xf32>, vector<1x8xf32> -> vector<3x8xf32>
    %56 = arith.maximumf %39, %55 : vector<3x8xf32>
    %57 = arith.truncf %56 : vector<3x8xf32> to vector<3x8xbf16>
    %58 = arith.extf %57 : vector<3x8xbf16> to vector<3x8xf32>
    %59 = arith.subf %39, %58 : vector<3x8xf32>
    %60 = math.exp %59 : vector<3x8xf32>
    %61 = arith.truncf %60 : vector<3x8xf32> to vector<3x8xbf16>
    %62 = arith.extf %61 : vector<3x8xbf16> to vector<3x8xf32>
    %c0_27 = arith.constant 0 : index
    %c0_28 = arith.constant 0 : index
    %63 = vector.load %arg12[%c0_27, %c0_28] : memref<3x8xf32, #tpu.memory_space<vmem>>, vector<3x8xf32>
    %64 = arith.mulf %63, %62 : vector<3x8xf32>
    %c0_29 = arith.constant 0 : index
    %c0_30 = arith.constant 0 : index
    %65 = vector.load %arg12[%c0_29, %c0_30] : memref<3x8xf32, #tpu.memory_space<vmem>>, vector<3x8xf32>
    tpu.vector_store %arg12[%c0_29, %c0_30], %64 {strides = array<i32>} : memref<3x8xf32, #tpu.memory_space<vmem>>, vector<3x8xf32>,
    %c0_31 = arith.constant 0 : index
    %c0_32 = arith.constant 0 : index
    %66 = vector.load %arg8[%c0_31, %c0_32] : memref<3x128xf32, #tpu.memory_space<vmem>>, vector<3x128xf32>
    %cst_33 = arith.constant dense<0.000000e+00> : vector<8x128xf32>
    %67 = tpu.matmul %62, %66, %cst_33 {dimension_numbers = #tpu.dot_dimension_numbers<[0], [0], [1], [1], [0, 1, 1, 1], [], []>} : vector<3x8xf32>, vector<3x128xf32>, vector<8x128xf32> -> vector<8x128xf32>
    %c0_34 = arith.constant 0 : index
    %c0_35 = arith.constant 0 : index
    %68 = vector.load %arg10[%c0_34, %c0_35] : memref<8x128xf32, #tpu.memory_space<vmem>>, vector<8x128xf32>
    %69 = arith.mulf %68, %67 : vector<8x128xf32>
    %c0_36 = arith.constant 0 : index
    %c0_37 = arith.constant 0 : index
    %70 = vector.load %arg10[%c0_36, %c0_37] : memref<8x128xf32, #tpu.memory_space<vmem>>, vector<8x128xf32>
    tpu.vector_store %arg10[%c0_36, %c0_37], %69 {strides = array<i32>} : memref<8x128xf32, #tpu.memory_space<vmem>>, vector<8x128xf32>,
    %c0_38 = arith.constant 0 : index
    %c0_39 = arith.constant 0 : index
    %71 = vector.load %arg11[%c0_38, %c0_39] : memref<3x8xf32, #tpu.memory_space<vmem>>, vector<3x8xf32>
    tpu.vector_store %arg11[%c0_38, %c0_39], %58 {strides = array<i32>} : memref<3x8xf32, #tpu.memory_space<vmem>>, vector<3x8xf32>,
    %cst_40 = arith.constant dense<0.000000e+00> : vector<16x3xf32>
    %72 = tpu.matmul %10, %58, %cst_40 {dimension_numbers = #tpu.dot_dimension_numbers<[1], [1], [0], [0], [0, 0, 1, 0], [], []>} : vector<16x8xf32>, vector<3x8xf32>, vector<16x3xf32> -> vector<16x3xf32>
    %73 = arith.subf %38, %72 : vector<16x3xf32>
    %74 = math.exp %73 : vector<16x3xf32>
    %c0_41 = arith.constant 0 : index
    %c0_42 = arith.constant 0 : index
    %75 = vector.load %arg12[%c0_41, %c0_42] : memref<3x8xf32, #tpu.memory_space<vmem>>, vector<3x8xf32>
    %cst_43 = arith.constant dense<0.000000e+00> : vector<3x8xf32>
    %76 = tpu.matmul %74, %10, %cst_43 {dimension_numbers = #tpu.dot_dimension_numbers<[0], [0], [1], [1], [0, 1, 1, 1], [], []>} : vector<16x3xf32>, vector<16x8xf32>, vector<3x8xf32> -> vector<3x8xf32>
    %77 = arith.addf %75, %76 : vector<3x8xf32>
    %c0_44 = arith.constant 0 : index
    %c0_45 = arith.constant 0 : index
    %78 = vector.load %arg12[%c0_44, %c0_45] : memref<3x8xf32, #tpu.memory_space<vmem>>, vector<3x8xf32>
    tpu.vector_store %arg12[%c0_44, %c0_45], %77 {strides = array<i32>} : memref<3x8xf32, #tpu.memory_space<vmem>>, vector<3x8xf32>,
    %c0_46 = arith.constant 0 : index
    %c0_47 = arith.constant 0 : index
    %79 = vector.load %arg8[%c0_46, %c0_47] : memref<3x128xf32, #tpu.memory_space<vmem>>, vector<3x128xf32>
    %cst_48 = arith.constant dense<0.000000e+00> : vector<16x128xf32>
    %80 = tpu.matmul %74, %79, %cst_48 {dimension_numbers = #tpu.dot_dimension_numbers<[1], [0], [0], [1], [0, 0, 1, 1], [], []>} : vector<16x3xf32>, vector<3x128xf32>, vector<16x128xf32> -> vector<16x128xf32>
    %c0_49 = arith.constant 0 : index
    %c0_50 = arith.constant 0 : index
    %81 = vector.load %arg3[%c0_49, %c0_50] : memref<16x128xbf16, #tpu.memory_space<vmem>>, vector<16x128xbf16>
    %82 = arith.extf %81 : vector<16x128xbf16> to vector<16x128xf32>
    %83 = arith.mulf %82, %80 : vector<16x128xf32>
    %84 = arith.truncf %83 : vector<16x128xf32> to vector<16x128xbf16>
    %c0_51 = arith.constant 0 : index
    %c0_52 = arith.constant 0 : index
    %85 = vector.load %arg10[%c0_51, %c0_52] : memref<8x128xf32, #tpu.memory_space<vmem>>, vector<8x128xf32>
    %cst_53 = arith.constant dense<0.000000e+00> : vector<8x128xf32>
    %86 = tpu.matmul %13, %84, %cst_53 {dimension_numbers = #tpu.dot_dimension_numbers<[0], [0], [1], [1], [0, 1, 1, 1], [], []>} : vector<16x8xbf16>, vector<16x128xbf16>, vector<8x128xf32> -> vector<8x128xf32>
    %87 = arith.addf %85, %86 : vector<8x128xf32>
    %c0_54 = arith.constant 0 : index
    %c0_55 = arith.constant 0 : index
    %88 = vector.load %arg10[%c0_54, %c0_55] : memref<8x128xf32, #tpu.memory_space<vmem>>, vector<8x128xf32>
    tpu.vector_store %arg10[%c0_54, %c0_55], %87 {strides = array<i32>} : memref<8x128xf32, #tpu.memory_space<vmem>>, vector<8x128xf32>,
    %c1_i32 = arith.constant 1 : i32
    %89 = arith.cmpi eq, %arg0, %c1_i32 : i32
    %90 = arith.extui %89 : i1 to i32
    %c0_i32_56 = arith.constant 0 : i32
    %91 = arith.cmpi ne, %90, %c0_i32_56 : i32
    scf.if %91 {
      %c0_57 = arith.constant 0 : index
      %c0_58 = arith.constant 0 : index
      %92 = vector.load %arg12[%c0_57, %c0_58] : memref<3x8xf32, #tpu.memory_space<vmem>>, vector<3x8xf32>
      %c0_59 = arith.constant 0 : index
      %c0_60 = arith.constant 0 : index
      %93 = vector.load %arg8[%c0_59, %c0_60] : memref<3x128xf32, #tpu.memory_space<vmem>>, vector<3x128xf32>
      %cst_61 = arith.constant dense<0.000000e+00> : vector<8x128xf32>
      %94 = tpu.matmul %92, %93, %cst_61 {dimension_numbers = #tpu.dot_dimension_numbers<[0], [0], [1], [1], [0, 1, 1, 1], [], []>} : vector<3x8xf32>, vector<3x128xf32>, vector<8x128xf32> -> vector<8x128xf32>
      %c0_62 = arith.constant 0 : index
      %c0_63 = arith.constant 0 : index
      %95 = vector.load %arg10[%c0_62, %c0_63] : memref<8x128xf32, #tpu.memory_space<vmem>>, vector<8x128xf32>
      %cst_64 = arith.constant 9.99999935E-39 : f32
      %96 = vector.broadcast %cst_64 : f32 to vector<8x128xf32>
      %97 = arith.maximumf %94, %96 : vector<8x128xf32>
      %98 = arith.divf %95, %97 : vector<8x128xf32>
      %c0_65 = arith.constant 0 : index
      %c0_66 = arith.constant 0 : index
      %99 = vector.load %arg10[%c0_65, %c0_66] : memref<8x128xf32, #tpu.memory_space<vmem>>, vector<8x128xf32>
      tpu.vector_store %arg10[%c0_65, %c0_66], %98 {strides = array<i32>} : memref<8x128xf32, #tpu.memory_space<vmem>>, vector<8x128xf32>,
    } else {
    }
    return
  }
  func.func @transform_0(%arg0: i32) -> (i32, i32) {
    %c0_i32 = arith.constant 0 : i32
    %c0_i32_0 = arith.constant 0 : i32
    return %arg0, %c0_i32 : i32, i32
  }
  func.func @transform_1(%arg0: i32) -> (i32, i32) {
    %c0_i32 = arith.constant 0 : i32
    %c0_i32_0 = arith.constant 0 : i32
    return %arg0, %c0_i32 : i32, i32
  }
  func.func @transform_2(%arg0: i32) -> (i32, i32) {
    %c0_i32 = arith.constant 0 : i32
    %c0_i32_0 = arith.constant 0 : i32
    return %arg0, %c0_i32 : i32, i32
  }
  func.func @transform_3(%arg0: i32) -> (i32, i32) {
    %c0_i32 = arith.constant 0 : i32
    %c0_i32_0 = arith.constant 0 : i32
    return %arg0, %c0_i32 : i32, i32
  }
  func.func @transform_4(%arg0: i32) -> (i32, i32) {
    %c0_i32 = arith.constant 0 : i32
    %c0_i32_0 = arith.constant 0 : i32
    return %arg0, %c0_i32 : i32, i32
  }
  func.func @transform_5(%arg0: i32) -> (i32, i32) {
    %c0_i32 = arith.constant 0 : i32
    %c0_i32_0 = arith.constant 0 : i32
    %c0_i32_1 = arith.constant 0 : i32
    return %c0_i32, %c0_i32_0 : i32, i32
  }
  func.func @transform_6(%arg0: i32) -> (i32, i32) {
    %c0_i32 = arith.constant 0 : i32
    %c0_i32_0 = arith.constant 0 : i32
    %c0_i32_1 = arith.constant 0 : i32
    return %c0_i32, %c0_i32_0 : i32, i32
  }
  func.func @transform_7(%arg0: i32) -> (i32, i32) {
    %c0_i32 = arith.constant 0 : i32
    %c0_i32_0 = arith.constant 0 : i32
    %c0_i32_1 = arith.constant 0 : i32
    return %c0_i32, %c0_i32_0 : i32, i32
  }
  func.func @transform_8(%arg0: i32) -> (i32, i32) {
    %c0_i32 = arith.constant 0 : i32
    %c0_i32_0 = arith.constant 0 : i32
    return %arg0, %c0_i32 : i32, i32
  }
  func.func @transform_9(%arg0: i32) -> (i32, i32) {
    %c0_i32 = arith.constant 0 : i32
    %c0_i32_0 = arith.constant 0 : i32
    %c0_i32_1 = arith.constant 0 : i32
    return %c0_i32, %c0_i32_0 : i32, i32
  }
}

</mosaic_0001>

<bundles_post_ra>
// kernel: tpu_custom_call.1
= control target key start
LH: loop header
LB: loop body
LE: loop exit
PB: predicated region body
PF: predicated region fallthrough
CT: control target
= control target key end

     0   :  { %s1721_s0 = inlined_call_operand.vmem [shape: bf16[32,128], index: 0, kind: input, shape index: {}]   ;;  %s1722_s1 = inlined_call_operand.vmem [shape: bf16[32,128], index: 1, kind: input, shape index: {}]   ;;  %s1723_s2 = inlined_call_operand.vmem [shape: bf16[32,128], index: 2, kind: input, shape index: {}]   ;;  %s1724_s3 = inlined_call_operand.vmem [shape: bf16[32,12], index: 3, kind: input, shape index: {}]   ;;  %s1725_s4 = inlined_call_operand.vmem [shape: s32[32,1], index: 4, kind: input, shape index: {}]   ;;  %s1726_s5 = inlined_call_operand.vmem [shape: bf16[12,128], index: 5, kind: input, shape index: {}]   ;;  %s1727_s6 = inlined_call_operand.vmem [shape: bf16[128,3], index: 6, kind: input, shape index: {}]   ;;  %s1728_s7 = inlined_call_operand.vmem [shape: f32[3,128], index: 7, kind: input, shape index: {}]   ;;  %s1729_s8 = inlined_call_operand.hbm [shape: bf16[32,128], index: 8, kind: output, shape index: {0}]   ;;  %s1730_s9 = inlined_call_operand.hbm [shape: f32[8,128], index: 9, kind: output, shape index: {1}]  }
   0x1   :  { %1738 = sst [smem:[#allocation16_spill]] %s1730_s9 }
   0x2   :  { %15 = vsyncpa [#allocation5], 0 }
   0x3   :  { %17 = vsyncpa [#allocation5 + $0x1], 0 }
   0x4   :  { %18 = vsyncpa [#allocation7], 0  ;;  %s1490_s30 = smov 0   ;;  %s1492_s10 = smov 0  }
   0x5   :  { %s1494_s11 = smov 0   ;;  %s1496_s12 = smov 0  }
   0x6 LB: > { %1739 = sst [smem:[#allocation10_spill]] %s1415_s30  ;;  %s1511_s13 = sadd.s32 4294967295, %s1427_s12   ;;  %s1427_s12 = sphi %s1496_s12, %s1752_s12   ;;  %s1423_s11 = sphi %s1494_s11, %s1754_s11   ;;  %s1419_s10 = sphi %s1492_s10, %s1756_s10   ;;  %s1415_s30 = sphi %s1490_s30, %s1755_s30  }
   0x7   : > { %1740 = sst [smem:[#allocation11_spill]] %s1423_s11  ;;  %s1151_s14 = sadd.s32 4294967294, %s1427_s12  }
   0x8   : > { %1741 = sst [smem:[#allocation12_spill]] %s1427_s12  ;;  %s1515_s15 = sadd.s32 1, %s1427_s12  }
   0x9   : > { %1742 = sst [smem:[#allocation13_spill]] %s1515_s15  ;;  %s224_s16 = sadd.s32 1, %s1423_s11 }
   0xa   : > { %s221_s17 = ssub.s32 %s1427_s12, %s1515_s15  ;;  %p234_p0 = scmp.ne.s32.totalorder %s1423_s11, %s1419_s10 }
   0xb   : > { %p222_p1 = scmp.eq.s32.totalorder %s221_s17, 0  ;;  %p235_p2 = scmp.eq.s32.totalorder %s1511_s13, 1 }
   0xc   : > { %p240_p3 = scmp.ne.s32.totalorder %s1419_s10, %s1415_s30  ;;  %p241_p4 = scmp.eq.s32.totalorder %s1151_s14, 1 }
   0xd   : > { %s1526_s18 = scalar_select %p222_p1, %s1423_s11, %s224_s16  }
   0xe   : > { %p1530_p5 = por %p235_p2, %p234_p0  ;;  %p1534_p6 = por %p241_p4, %p240_p3 }
   0xf   : > { %1743 = sst [smem:[#allocation14_spill]] %s1526_s18  ;;  %p1154_p7 = scmp.ge.s32.totalorder %s1427_s12, 1 }
  0x10   : > { %s1745_s20 = scalar_select %p1534_p6, 1, 0 }
  0x11   : > { %p334_p8 = scmp.lt.s32.totalorder %s1427_s12, 3 }
  0x12   : > { %1746 = sst [smem:[#allocation15_spill]] %s1745_s20 }
  0x13   : > { %p335_p9 = pnand %p1154_p7, %p334_p8 }
  0x14   : > { %s1731_s21 = sand.u32 (!%p335_p9), 1, %s1419_s10   ;;  %s1156_s22 = sshll.u32 (!%p335_p9), %s1511_s13, 1 }
  0x15   : > { %338 = sbr.rel (%p335_p9) target bundleno = 1410 (0x582), region = 52  ;;  %s1544_s23 = sshll.u32 (!%p335_p9), %s1731_s21, 3 }
  0x16   : > { %p391_p10 = scmp.lt.s32.totalorder (!%p335_p9), %s1156_s22, 3  ;;  %s387_s9 = scalar_lea.vmem (!%p335_p9), [#allocation4], %s1544_s23 }
  0x17   : > { %p1166_p11 = scmp.ne.s32.totalorder (!%p335_p9), %s1511_s13, 0 }
  0x1a   : > { %s1758_s22 = smov (!%p391_p10, %s1156_s22), 3  ;;  %425 = sbr.rel (%p1166_p11) target bundleno = 35 (0x23), region = 56 }
  0x1b   : > { %s1546_s24 = sshll.u32 %s1758_s22, 2  ;;  %s1165_s25 = sshll.u32 %s1758_s22, 3 }
  0x1c   : > { %s394_s28 = scalar_lea.vmem %s1721_s0, %s1546_s24  ;;  %s400_s16 = scalar_lea.vmem %s1722_s1, %s1546_s24 }
  0x1d   : > { %s406_s18 = scalar_lea.vmem %s1723_s2, %s1546_s24  ;;  %s412_s20 = scalar_lea.vmem %s1724_s3, %s1546_s24 }
  0x1e   : > { %s1567_s22 = scalar_lea.vmem %s1725_s4, %s1165_s25 }
  0x1f   : > { %vm426_vm0 = vcmask 59392   ;;  %v1429_v0 = vmov -1.2676506e+30   ;;  %v1430_v1 = vmov 0.0  }
  0x20   : > { %427 = vst.msk [vmem:[#allocation2] sm:$0x7] %vm426_vm0, %v1429_v0 }
  0x21   : > { %428 = vst.msk [vmem:[#allocation3] sm:$0x7] %vm426_vm0, %v1430_v1 }
  0x22   : > { %429 = vst [vmem:[#allocation6] sm:$0xff] %v1430_v1 }
  0x23 PF: > { %v1175_v2 = vld [vmem:[%s1726_s5] sm:$0xf]  ;;  %v1233_v3 = vld [vmem:[%s1726_s5] sm:$0x30]  ;;  %vm479_vm1 = vcmask 1045504   ;;  %v1241_v5 = vld [vmem:[%s1727_s6 + $0x38] sm:$0xff]  ;;  %v434_v51 = vlaneseq }
  0x24   : > { %v1176_v4 = vor.u32 %v1233_v3, %v1175_v2  ;;  %v1232_v7 = vld [vmem:[%s412_s20] sm:$0xff]  ;;  %579 = vmatpush.bf16.msra.mxu1 %v1241_v5  ;;  %v1240_v8 = vld [vmem:[%s1727_s6 + $0x30] sm:$0xff]  ;;  %vm475_vm2 = vcmask 97280   ;;  %v1239_v9 = vld [vmem:[%s1727_s6 + $0x28] sm:$0xff]  ;;  %v1431_v16 = vmov 0   ;;  %v1432_v42 = vmov 1  }
  0x25   : > { %v1238_v10 = vld [vmem:[%s1727_s6 + $0x20] sm:$0xff]  ;;  %v1237_v11 = vld [vmem:[%s1727_s6 + $0x18] sm:$0xff]  ;;  %v1236_v12 = vld [vmem:[%s1727_s6 + $0x10] sm:$0xff]  ;;  %1317 = vset.pattern.permute.xlu0 %v1431_v16  ;;  %1318 = vset.pattern.permute.xlu1 %v1431_v16  ;;  %v1433_v49 = vmov 2   ;;  %v435_v52 = vand.u32 127, %v434_v51  ;;  %v1434_v54 = vmov 0.0  }
  0x26   : > { %v481_v6 = vsel %vm479_vm1, %v1176_v4, 0  ;;  %v1235_v13 = vld [vmem:[%s1727_s6 + $0x8] sm:$0xff]  ;;  %v1234_v14 = vld [vmem:[%s1727_s6] sm:$0xff]  ;;  %1319 = vset.pattern.permute.xlu2 %v1431_v16  ;;  %vm719_vm11 = vcmask 1042432   ;;  %v1435_v59 = vmov 1.0   ;;  %v1436_v61 = vmov -1.2676506e+30  }
  0x27   : > { %490 = vmatpush.bf16.msra.mxu0 %v481_v6  ;;  %v430_v15 = vld [vmem:[%s1567_s22] sm:$0xff]  ;;  %v431_v18 = vld [vmem:[%s1567_s22 + $0x8] sm:$0xff]  ;;  %vm618_vm12 = vcmask 64512   ;;  %vm666_vm13 = vcmask 1040384   ;;  %vm668_vm14 = vcmask 1041408   ;;  %vm680_vm15 = vcmask 59392  }
  0x28   : > { %580 = vmatpush.bf16.msra.mxu1 %v1240_v8  ;;  %vm432_vm3 = vcmp.ge.s32.totalorder %v430_v15, 0  ;;  %v1244_v19 = vld [vmem:[%s394_s28] sm:$0xff]   ;;  %437 = vperm.xlu1 %1318, %v430_v15   ;;  %vm433_vm4 = vcmp.ge.s32.totalorder %v431_v18, 0  ;;  %vm715_vm0 = vcmask 23552   ;;  %vm818_vm1 = vcmask 130048   ;;  %p1222_p12 = scmp.ne.s32.totalorder %s1511_s13, 1 }
  0x29   : > { %v593_v17 = vsel %vm432_vm3, 1, %v1431_v16  ;;  %v1248_v20 = vld [vmem:[%s400_s16] sm:$0xff]   ;;  %v1245_v21 = vunpack.c.l.bf16 %v1244_v19  ;;  %v594_v23 = vsel %vm433_vm4, 1, %v1431_v16  ;;  %v1246_v27 = vunpack.c.h.bf16 %v1244_v19 }
  0x2a   : > { %1177 = vmatmul.msk.bf16.vlgmr.msra.gmra.mxu0 %vm475_vm2, %v1232_v7  ;;  %596 = vperm.xlu0 %1317, %v593_v17   ;;  %v1249_v22 = vunpack.c.l.bf16 %v1248_v20  ;;  %v1250_v28 = vunpack.c.h.bf16 %v1248_v20  ;;  %v682_v58 = vld [vmem:[%s1728_s7] sm:$0x7]  ;;  %v678_v51 = vld [vmem:[#allocation3] sm:$0x7] }
  0x2b   : > { %1210 = vmatpush.msk.msra.mxu2 %vm719_vm11, %v682_v58 }
  0x2c   : > { %581 = vmatpush.bf16.msra.mxu1 %v1239_v9  ;;  %v459_v24 = vadd.f32 %v1249_v22, %v1245_v21  ;;  %v460_v30 = vadd.f32 %v1250_v28, %v1246_v27 }
  0x30   : > { %582 = vmatpush.bf16.msra.mxu1 %v1238_v10  ;;  %440 = vperm.xlu1 %1318, %v431_v18  }
  0x32   : > { %599 = vperm.xlu0 %1317, %v594_v23  }
  0x34   : > { %583 = vmatpush.bf16.msra.mxu1 %v1237_v11 }
  0x38   : > { %584 = vmatpush.bf16.msra.mxu1 %v1236_v12  ;;  %1322 = vset.pattern.permute.xlu1 %v1432_v42 }
  0x3a   : > { %1320 = vset.pattern.permute.xlu0 %v1432_v42 }
  0x3c   : > { %585 = vmatpush.bf16.msra.mxu1 %v1235_v13 }
  0x40   : > { %586 = vmatpush.bf16.msra.mxu1 %v1234_v14 }
  0x9a   : > { %v438_v50 = vpop.permute.xlu1 %437 }
  0x9b   : > { %vm442_vm9 = vcmp.eq.s32.totalorder %v438_v50, %v435_v52 }
  0x9c   : > { %v597_v43 = vpop.permute.xlu0 %596  ;;  %v1628_v55 = vsel %vm442_vm9, 1.0, %v1434_v54  ;;  %v449_v0 = vsel %vm442_vm9, 0.0, %v1436_v61 }
  0x9d   : > { %vm601_vm7 = vcmp.eq.s32.totalorder %v597_v43, 1 }
  0xa2   : > { %v441_v53 = vpop.permute.xlu1 %440 }
  0xa3   : > { %vm443_vm10 = vcmp.eq.s32.totalorder %v441_v53, %v435_v52 }
  0xa4   : > { %v600_v46 = vpop.permute.xlu0 %599  ;;  %v1630_v56 = vsel %vm443_vm10, 1.0, %v1434_v54  ;;  %1215 = vmatpush.msk.msrb.mxu2 %vm443_vm10, %v1435_v59  ;;  %v450_v62 = vsel %vm443_vm10, 0.0, %v1436_v61 }
  0xa5   : > { %vm602_vm8 = vcmp.eq.s32.totalorder %v600_v46, 1  ;;  %v448_v57 = vpack.c.bf16 %v1630_v56, %v1628_v55 }
  0xa6   : > { %1216 = vmatpush.msk.msrb.mxu2 %vm442_vm9, %v1435_v59 }
  0xa7   : > { %v492_v25 = vpop.f32.mrf.mxu0 }
  0xa8   : > { %v497_v26 = vadd.f32 %v492_v25, %v459_v24 }
  0xaa   : > { %v501_v29 = vmul.f32 0.01, %v497_v26  ;;  %vm499_vm5 = vcmp.ge.f32.partialorder %v497_v26, 0.0 }
  0xac   : > { %v503_v33 = vsel %vm499_vm5, %v497_v26, %v501_v29 }
  0xad   : > { %v505_v35 = vpack.c.bf16 %v503_v33, %v503_v33 }
  0xaf   : > { %v494_v31 = vpop.f32.mrf.mxu0  ;;  %v527_v39 = vunpack.c.l.b16 %v505_v35 }
  0xb0   : > { %v498_v32 = vadd.f32 %v494_v31, %v460_v30 }
  0xb2   : > { %vm500_vm6 = vcmp.ge.f32.partialorder %v498_v32, 0.0  ;;  %v502_v34 = vmul.f32 0.01, %v498_v32 }
  0xb4   : > { %v504_v36 = vsel %vm500_vm6, %v498_v32, %v502_v34 }
  0xb5   : > { %v506_v37 = vpack.c.bf16 %v504_v36, %v504_v36  ;;  %v1254_v38 = vpack.c.bf16 %v504_v36, %v503_v33 }
  0xb7   : > { %1255 = vst [vmem:[%s387_s9] sm:$0xff] %v1254_v38   ;;  %v528_v40 = vunpack.c.l.b16 %v506_v37  ;;  %v605_v38 = vld [vmem:[#allocation2] sm:$0x7] }
  0xb9   : > { %v529_v41 = vpack.c.b16 %v528_v40, %v527_v39 }
  0xbb   : > { %587 = vmatmul.bf16.vlgmr.msra.gmra.mxu1 %v529_v41 }
 0x138   : > { %v588_v44 = vpop.f32.mrf.mxu1 }
 0x139   : > { %v1615_v45 = vsel %vm601_vm7, %v588_v44, -1.2676506e+30 }
 0x13a   : > { %629 = vperm.xlu0 %1320, %v1615_v45   ;;  %608 = vperm.xlu2 %1319, %v1615_v45  }
 0x140   : > { %v590_v47 = vpop.f32.mrf.mxu1 }
 0x141   : > { %v1619_v48 = vsel %vm602_vm8, %v590_v47, -1.2676506e+30 }
 0x142   : > { %633 = vperm.xlu1 %1322, %v1619_v48   ;;  %613 = vperm.xlu2 %1319, %v1619_v48  }
 0x14a   : > { %1323 = vset.pattern.permute.xlu1 %v1433_v49  ;;  %1321 = vset.pattern.permute.xlu2 %v1433_v49 }
 0x14b   : > { %652 = vperm.xlu1 %1323, %v1619_v48   ;;  %648 = vperm.xlu2 %1321, %v1615_v45  }
 0x180   : > { %885 = vxpose.xlu1.c.b16.start.end [1/1] (short) (narrow) %v448_v57, 16 }
 0x194   : > { %v609_v60 = vpop.permute.xlu2 %608 }
 0x195   : > { %v616_v2 = vadd.f32 %v609_v60, %v449_v0 }
 0x197   : > { %v619_v5 = vsel %vm618_vm12, %v616_v2, -inf }
 0x19c   : > { %v614_v63 = vpop.permute.xlu2 %613 }
 0x19d   : > { %v617_v1 = vadd.f32 %v614_v63, %v450_v62 }
 0x19f   : > { %v620_v4 = vsel %vm618_vm12, %v617_v1, -inf }
 0x1a0   : > { %v621_v7 = vmax.f32 %v619_v5, %v620_v4 }
 0x1a2   : > { %v622_v12 = vrot.slane %v621_v7, 4 }
 0x1a4   : > { %v623_v16 = vmax.f32 %v621_v7, %v622_v12 }
 0x1a5   : > { %v649_v14 = vpop.permute.xlu2 %648 }
 0x1a6   : > { %v655_v17 = vadd.f32 %v649_v14, %v449_v0  ;;  %v624_v22 = vrot.slane %v623_v16, 2 }
 0x1a8   : > { %v657_v23 = vsel %vm618_vm12, %v655_v17, -inf  ;;  %v625_v28 = vmax.f32 %v623_v16, %v624_v22 }
 0x1aa   : > { %v626_v32 = vrot.slane %v625_v28, 1 }
 0x1ac   : > { %v630_v3 = vpop.permute.xlu0 %629  ;;  %v627_v36 = vmax.f32 %v625_v28, %v626_v32 }
 0x1ad   : > { %v636_v6 = vadd.f32 %v630_v3, %v449_v0  ;;  %v1257_v3 = vld [vmem:[%s406_s18] sm:$0xff]  }
 0x1ae   : > { %v1258_v4 = vunpack.c.l.bf16 %v1257_v3  ;;  %v1259_v5 = vunpack.c.h.bf16 %v1257_v3 }
 0x1af   : > { %v638_v10 = vsel %vm618_vm12, %v636_v6, -inf }
 0x1b4   : > { %v634_v8 = vpop.permute.xlu1 %633 }
 0x1b5   : > { %v637_v9 = vadd.f32 %v634_v8, %v450_v62 }
 0x1b7   : > { %v639_v11 = vsel %vm618_vm12, %v637_v9, -inf }
 0x1b8   : > { %v640_v13 = vmax.f32 %v638_v10, %v639_v11  ;;  %v743_v11 = vld [vmem:[#allocation6] sm:$0xff] }
 0x1ba   : > { %v641_v15 = vrot.slane %v640_v13, 4 }
 0x1bc   : > { %v642_v18 = vmax.f32 %v640_v13, %v641_v15 }
 0x1bd   : > { %v653_v19 = vpop.permute.xlu1 %652 }
 0x1be   : > { %v643_v20 = vrot.slane %v642_v18, 2  ;;  %v656_v21 = vadd.f32 %v653_v19, %v450_v62 }
 0x1c0   : > { %v658_v24 = vsel %vm618_vm12, %v656_v21, -inf  ;;  %v644_v26 = vmax.f32 %v642_v18, %v643_v20 }
 0x1c1   : > { %v659_v25 = vmax.f32 %v657_v23, %v658_v24 }
 0x1c2   : > { %v645_v30 = vrot.slane %v644_v26, 1 }
 0x1c3   : > { %v660_v27 = vrot.slane %v659_v25, 4 }
 0x1c4   : > { %v646_v34 = vmax.f32 %v644_v26, %v645_v30 }
 0x1c5   : > { %v661_v29 = vmax.f32 %v659_v25, %v660_v27 }
 0x1c6   : > { %v667_v39 = vsel %vm666_vm13, %v627_v36, %v646_v34 }
 0x1c7   : > { %v662_v31 = vrot.slane %v661_v29, 2 }
 0x1c9   : > { %v663_v33 = vmax.f32 %v661_v29, %v662_v31 }
 0x1cb   : > { %v664_v35 = vrot.slane %v663_v33, 1 }
 0x1cd   : > { %v665_v37 = vmax.f32 %v663_v33, %v664_v35 }
 0x1cf   : > { %v669_v40 = vsel %vm668_vm14, %v667_v39, %v665_v37 }
 0x1d0   : > { %v670_v41 = vmax.f32 %v605_v38, %v669_v40 }
 0x1d2   : > { %v671_v42 = vpack.c.bf16 %v670_v41, %v670_v41 }
 0x1d4   : > { %v672_v43 = vunpack.c.l.bf16 %v671_v42 }
 0x1d6   : > { %746 = vst.msk [vmem:[#allocation2] sm:$0x7] %vm680_vm15, %v672_v43  ;;  %1212 = vmatpush.xpose.msk.msra.mxu3 %vm618_vm12, %v672_v43  ;;  %v673_v44 = vsub.f32 %v605_v38, %v672_v43 }
 0x1d8   : > { %v674_v46 = vmul.f32 1.442695, %v673_v44 }
 0x1d9   : > { %1213 = vmatmul.msk.f32.vlgmr.msra.gmra.mxu3 %vm618_vm12, %v1628_v55 }
 0x1da   : > { %1325 = vpow2.f32 %v674_v46 }
 0x1e0   : > { %v1326_v47 = vpop.eup %1325 }
 0x1e1   : > { %1214 = vmatmul.msk.f32.gmra.mxu3 %vm618_vm12, %v1630_v56  ;;  %v676_v50 = vpack.c.bf16 %v1326_v47, %v1326_v47 }
 0x1e3   : > { %v677_v52 = vunpack.c.l.bf16 %v676_v50 }
 0x1e5   : > { %683 = vxpose.xlu2.b32.start.end [1/1] (short) (narrow) %v677_v52, 8  ;;  %v679_v53 = vmul.f32 %v678_v51, %v677_v52 }
 0x1e7   : > { %681 = vst.msk [vmem:[#allocation3] sm:$0x7] %vm680_vm15, %v679_v53 }
 0x1ee   : > { %v785_v0 = vld [vmem:[#allocation3] sm:$0x7] }
 0x22c   : > { %v893_v10 = vpop.trf.xlu1 }
 0x25c   : > { %v773_v54 = vpop.f32.mrf.mxu3 }
 0x25d   : > { %v779_v57 = vsub.f32 %v1615_v45, %v773_v54  ;;  %v844_v45 = vld [vmem:[%s1728_s7] sm:$0x7] }
 0x25f   : > { %v781_v58 = vmul.f32 1.442695, %v779_v57 }
 0x261   : > { %1327 = vpow2.f32 %v781_v58 }
 0x264   : > { %v776_v59 = vpop.f32.mrf.mxu3 }
 0x265   : > { %v780_v55 = vsub.f32 %v1619_v48, %v776_v59 }
 0x267   : > { %v1328_v60 = vpop.eup %1327  ;;  %v783_v61 = vmul.f32 1.442695, %v780_v55 }
 0x268   : > { %786 = vxpose.xlu0.b32.start [1/2] (short) (narrow) %v1328_v60, 8 }
 0x269   : > { %1329 = vpow2.f32 %v783_v61 }
 0x26f   : > { %v1330_v56 = vpop.eup %1329 }
 0x270   : > { %787 = vxpose.xlu0.b32.end [2/2] (short) (narrow) %v1330_v56, 8 }
 0x27e   : > { %v699_v62 = vpop.trf.xlu2 }
 0x27f   : > { %1211 = vmatmul.msk.f32.vlgmr.msra.gmra.mxu2 %vm715_vm0, %v699_v62 }
 0x280   : > { %1218 = vmatpush.msk.msra.mxu2 %vm719_vm11, %v844_v45 }
 0x2d7   : > { %1324 = vset.pattern.permute.xlu0 %v1433_v49 }
 0x302   : > { %v740_v63 = vpop.f32.mrf.mxu2 }
 0x303   : > { %v744_v12 = vmul.f32 %v743_v11, %v740_v63 }
 0x30c   : > { %v802_v48 = vpop.trf.xlu0 }
 0x30d   : > { %1217 = vmatmul.msk.f32.vlgmr.msrb.gmra.mxu2 %vm818_vm1, %v802_v48 }
 0x315   : > { %1219 = vmatmul.msk.f32.vlgmr.msra.gmra.mxu2 %vm715_vm0, %v1328_v60 }
 0x31d   : > { %1220 = vmatmul.msk.f32.gmra.mxu2 %vm715_vm0, %v1330_v56 }
 0x390   : > { %v839_v1 = vpop.f32.mrf.mxu2 }
 0x391   : > { %v842_v2 = vadd.f32 %v839_v1, %v785_v0 }
 0x393   : > { %843 = vst.msk [vmem:[#allocation3] sm:$0x7] %vm680_vm15, %v842_v2 }
 0x398   : > { %v871_v49 = vpop.f32.mrf.mxu2 }
 0x399   : > { %v881_v7 = vmul.f32 %v1258_v4, %v871_v49 }
 0x3a0   : > { %v874_v6 = vpop.f32.mrf.mxu2 }
 0x3a1   : > { %v882_v8 = vmul.f32 %v1259_v5, %v874_v6 }
 0x3a3   : > { %v883_v9 = vpack.c.bf16 %v882_v8, %v881_v7 }
 0x3a5   : > { %911 = vmatpush.bf16.msrb.mxu0 %v883_v9 }
 0x3a8   : > { %1221 = vmatmul.msk.bf16.vlgmr.msrb.gmra.mxu0 %vm818_vm1, %v893_v10 }
 0x425   : > { %v913_v13 = vpop.f32.mrf.mxu0 }
 0x426   : > { %v917_v14 = vadd.f32 %v913_v13, %v744_v12 }
 0x428   : > { %918 = vst [vmem:[#allocation6] sm:$0xff] %v917_v14 }
 0x429   : > { %922 = sbr.rel (%p1222_p12) target bundleno = 1384 (0x568), region = 60 }
 0x42d   : > { %v915_v15 = vpop.f32.mrf.mxu0 }
 0x42e   : > { %v923_v16 = vld [vmem:[#allocation3] sm:$0x7]  ;;  %v924_v17 = vld [vmem:[%s1728_s7] sm:$0x7] }
 0x42f   : > { %925 = vxpose.xlu0.b32.start.end [1/1] (short) (narrow) %v923_v16, 8  ;;  %1223 = vmatpush.msk.msra.mxu0 %vm719_vm11, %v924_v17  ;;  %v983_v28 = vld [vmem:[#allocation6] sm:$0xff] }
 0x4d3   : > { %v941_v18 = vpop.trf.xlu0 }
 0x4d4   : > { %1224 = vmatmul.msk.f32.vlgmr.msra.gmra.mxu0 %vm715_vm0, %v941_v18 }
 0x551   : > { %v980_v19 = vpop.f32.mrf.mxu0 }
 0x552   : > { %v984_v20 = vmax.f32 %v980_v19, 1e-38 }
 0x554   : > { %1331 = vrcp.f32 %v984_v20  ;;  %v996_v24 = vand.u32 2147483648, %v984_v20  ;;  %v994_v26 = vand.u32 2147483647, %v984_v20  ;;  %vm990_vm3 = vweird.f32 %v984_v20 }
 0x556   : > { %v997_v29 = vor.u32 1.1754944e-38, %v996_v24  ;;  %vm995_vm5 = vcmp.eq.f32.partialorder %v994_v26, 8.507059e+37 }
 0x55a   : > { %v1332_v21 = vpop.eup %1331 }
 0x55b   : > { %v986_v22 = vmul.f32 %v1332_v21, %v984_v20  ;;  %vm991_vm2 = vweird.f32 %v1332_v21 }
 0x55c   : > { %vm992_vm4 = vmor %vm990_vm3, %vm991_vm2 }
 0x55d   : > { %v987_v23 = vsub.f32 1.0, %v986_v22 }
 0x55f   : > { %v988_v25 = vmul.f32 %v1332_v21, %v987_v23 }
 0x561   : > { %v989_v27 = vadd.f32 %v1332_v21, %v988_v25 }
 0x563   : > { %v993_v30 = vsel %vm992_vm4, %v1332_v21, %v989_v27 }
 0x564   : > { %v998_v31 = vsel %vm995_vm5, %v997_v29, %v993_v30 }
 0x565   : > { %v999_v32 = vmul.f32 %v998_v31, %v983_v28 }
 0x567   : > { %1000 = vst [vmem:[#allocation6] sm:$0xff] %v999_v32 }
 0x568 PF: > { %s1242_s15 = sshll.u32 %s1511_s13, 3  ;;  %s1014_s27 = sshll.u32 %s387_s9, 4  ;;  %s1015_s27 = int_to_ptr.vmem [resolvable:$true] %s1014_s27 }
 0x569   : > { %s1013_s25 = scalar_lea.hbm %s1729_s8, %s1242_s15  ;;  %s1747_s14 = sand.u32 1, %s1419_s10  }
 0x56a   : > { %s1016_s29 = sshll.u32 %s1013_s25, 4  ;;  %s1002_s17 = scalar_lea.sflag [#allocation5], %s1747_s14  ;;  %s1017_s29 = int_to_ptr.hbm [resolvable:$true] %s1016_s29 }
 0x56b   : > { %s1347_s21 = sshra.s32 %s1017_s29, 4  ;;  %s1353_s20 = scalar_lea.hbm %s1729_s8, 16  ;;  %s1348_s21 = int_to_ptr.hbm [resolvable:$true] %s1347_s21 }
 0x56c   : > { %s1349_s28 = scalar_lea.hbm %s1348_s21, 8  ;;  %p1354_p3 = scmp.lt.s32.totalorder %s1348_s21, %s1729_s8 }
 0x56d   : > { %p1350_p13 = scmp.ne.s32.totalorder %s1348_s21, %s1349_s28  ;;  %p1355_p4 = scmp.lt.s32.totalorder %s1353_s20, %s1349_s28 }
 0x56f   : > { %p1351_p0 = pnand %p1350_p13, %p1530_p5  ;;  %p1356_p7 = por %p1355_p4, %p1354_p3 }
 0x571   : > { %p1352_p1 = pneg %p1351_p0 }
 0x573   : > { %p1357_p8 = pnand %p1356_p7, %p1352_p1 }
 0x575   : > { %1360 = shalt.err (!%p1357_p8)
}
 0x576   : > { %s1437_s9 = smov 64   ;;  %s1438_s23 = smov 4  }
 0x577   : > { %1260 = dma.vmem_to_hbm [thread:$0]  (%p1530_p5), %s1015_s27, 128, %s1017_s29, %s1002_s17, %s1437_s9, %s1437_s9, %s1438_s23  }
 0x578   : > { %s1439_s18 = smov [#allocation6]   ;;  %s1748_s12 = sld [smem:[#allocation16_spill]] }
 0x579   : > { %s1029_s24 = sshll.u32 %s1439_s18, 4  ;;  %s1030_s24 = int_to_ptr.vmem [resolvable:$true] %s1029_s24 }
 0x57e   : > { %s1031_s25 = sshll.u32 %s1748_s12, 4  ;;  %s1032_s25 = int_to_ptr.hbm [resolvable:$true] %s1031_s25 }
 0x57f   : > { %1262 = dma.vmem_to_hbm [thread:$0]  (%p235_p2), %s1030_s24, 128, %s1032_s25, [#allocation7]  }
 0x580   : > { %1406 = dma.done.wait (%p235_p2), [#allocation7], 128  }
 0x581   : > { %1408 = vsyncadd (%p235_p2), [#allocation7], 4294967168 }
 0x582 PF: > { %s1749_s14 = sld [smem:[#allocation12_spill]] }
 0x583   : > { %s1750_s21 = sld [smem:[#allocation10_spill]] }
 0x588   : > { %p1272_p5 = scmp.ge.s32.totalorder %s1749_s14, 2 }
 0x589   : > { %s1048_s27 = sand.u32 1, %s1750_s21  }
 0x58a   : > { %p1267_p9 = pnand %p1272_p5, %p1534_p6  ;;  %s1049_s29 = scalar_lea.sflag [#allocation5], %s1048_s27 }
 0x58c   : > { %p1268_p10 = pneg %p1267_p9 }
 0x58e   : > { %1410 = dma.done.wait (%p1268_p10), %s1049_s29, 128  }
 0x58f   : > { %1412 = vsyncadd (%p1268_p10), %s1049_s29, 4294967168  ;;  %s1752_s12 = sld [smem:[#allocation13_spill]]  ;;  %s1755_s30 = smov %s1419_s10 }
 0x590   : > { %s1753_s17 = sld [smem:[#allocation11_spill]] }
 0x591   : > { %s1754_s11 = sld [smem:[#allocation14_spill]] }
 0x595   : > { %p21_p11 = scmp.ge.s32.totalorder %s1752_s12, 4  }
 0x596   : > { %s1756_s10 = smov %s1753_s17 }
 0x597   :  { %23 = sbr.rel (!%p21_p11) target bundleno = 6 (0x6), region = 115 }
 0x59c   :  { %1055 = vsyncpa [#allocation5], 1 }
 0x59d   :  { %1057 = vsyncpa [#allocation5 + $0x1], 1 }
 0x59e   :  { %1058 = vsyncpa [#allocation7], 1 }

</bundles_post_ra>
